<compile_context>
chip_gen: v5e
topology: v5e:2x2
jax: 0.10.0
libtpu: 0.0.40
codegen_flags: <defaults>
</compile_context>

<pallas_src>
import numpy as np
import jax
import jax.numpy as jnp
from jax.experimental import pallas as pl
from jax.experimental.pallas import tpu as pltpu

# ----------------------------- config (small shapes) -----------------------------
B = 2
IN_DIM = 64          # module uses 1280; scaled down for a small synthetic run
HIDDEN = 128
NUM_ANCHORS = 9
NUM_CLASSES = 20
H = W = 7
N_BOX = 2
LEAKY_SLOPE = 0.01   # nn.LeakyReLU() default
OUT_CH = 5 * NUM_ANCHORS + NUM_CLASSES   # 65
OUT_PAD = 128                            # lane-dense padded channel count
ROWS = B * H * W                         # 98
ROWS_PAD = 128                           # sublane-aligned padded row count
AHW = NUM_ANCHORS * H * W                # 441
AHW_PAD = 512                            # lane-dense padded proposal count
STEM_IN = 8                              # stem K padded 3 -> 8

ANCHOR_LIST = jnp.array([[1.0, 1], [2, 2], [3, 3], [4, 4], [5, 5],
                         [2, 3], [3, 2], [3, 5], [5, 3]], dtype=jnp.float32)

# Static channel masks: which output channels get sigmoid (conf) and which get
# sigmoid-0.5 (tx, ty).  Baked at trace time -> no iota / integer modulo in-kernel.
_cols = np.arange(OUT_PAD)
_is_anc = _cols < 5 * NUM_ANCHORS
MASK_CONF = jnp.asarray((_is_anc & (_cols % 5 == 0)).astype(np.float32))[None, :]
MASK_XY = jnp.asarray((_is_anc & ((_cols % 5 == 1) | (_cols % 5 == 2))
                       ).astype(np.float32))[None, :]


# ================================ Pallas kernels =================================

def _fused_head_kernel(x_ref, wf_ref, bf_ref, w1_ref, b1_ref, w2_ref, b2_ref,
                       mc_ref, mxy_ref, o_ref):
    """Fused: stem 1x1 conv -> head conv1 -> LeakyReLU -> head conv2 -> epilogue.

    Matmuls run with bf16 operands / f32 accumulation; everything elementwise
    stays f32.  Output is (ROWS_PAD, OUT_PAD) = (128, 128), fully lane-dense.
    """
    x = x_ref[...].astype(jnp.bfloat16)                              # (R, 8)
    f = jnp.dot(x, wf_ref[...], preferred_element_type=jnp.float32) + bf_ref[...]
    h = jnp.dot(f.astype(jnp.bfloat16), w1_ref[...],
                preferred_element_type=jnp.float32) + b1_ref[...]
    # TODO(synk): nn.Dropout(p=0.3) omitted (deterministic / eval semantics).
    h = jnp.where(h > 0, h, LEAKY_SLOPE * h)                         # LeakyReLU
    y = jnp.dot(h.astype(jnp.bfloat16), w2_ref[...],
                preferred_element_type=jnp.float32) + b2_ref[...]    # (R, OUT_PAD)

    # Numerically-stable sigmoid via tanh (EUP slot).
    sig = 0.5 * jnp.tanh(0.5 * y) + 0.5
    is_conf = mc_ref[...] > 0.0          # (1, OUT_PAD) conf channels  (d == 0)
    is_xy = mxy_ref[...] > 0.0           # (1, OUT_PAD) tx/ty channels (d in {1,2})
    o_ref[...] = jnp.where(is_conf, sig, jnp.where(is_xy, sig - 0.5, y))


def fused_stem_head_pallas(params, x_pad):
    """x_pad: (ROWS_PAD, STEM_IN) f32 -> (ROWS_PAD, OUT_PAD) f32."""
    wf = jnp.pad(params['wf'], ((0, STEM_IN - params['wf'].shape[0]), (0, 0))
                 ).astype(jnp.bfloat16)                              # (8, IN_DIM)
    w1 = params['w1'].astype(jnp.bfloat16)                           # (IN_DIM, HIDDEN)
    w2 = jnp.pad(params['w2'], ((0, 0), (0, OUT_PAD - OUT_CH))
                 ).astype(jnp.bfloat16)                              # (HIDDEN, OUT_PAD)
    b2 = jnp.pad(params['b2'], ((0, 0), (0, OUT_PAD - OUT_CH)))      # (1, OUT_PAD)
    return pl.pallas_call(
        _fused_head_kernel,
        out_shape=jax.ShapeDtypeStruct((ROWS_PAD, OUT_PAD), jnp.float32),
    )(x_pad, wf, params['bf'], w1, params['b1'], w2, b2, MASK_CONF, MASK_XY)


def _iou_kernel(prop_ref, box_ref, out_ref):
    """Lane-major IoU: proposals (4, AHW_PAD) x boxes (N, 4) -> (N, AHW_PAD)."""
    props = prop_ref[0]                       # (4, AHW_PAD)
    boxes = box_ref[0]                        # (N, 4)
    px1 = props[0:1, :]
    py1 = props[1:2, :]
    px2 = props[2:3, :]
    py2 = props[3:4, :]
    bx1 = boxes[:, 0:1]
    by1 = boxes[:, 1:2]
    bx2 = boxes[:, 2:3]
    by2 = boxes[:, 3:4]
    max_x1 = jnp.maximum(px1, bx1)            # (N, AHW_PAD)
    max_y1 = jnp.maximum(py1, by1)
    min_x2 = jnp.minimum(px2, bx2)
    min_y2 = jnp.minimum(py2, by2)
    inter = jnp.maximum(min_x2 - max_x1, 0.0) * jnp.maximum(min_y2 - max_y1, 0.0)
    b_area = (bx2 - bx1) * (by2 - by1)        # (N, 1)
    p_area = (px2 - px1) * (py2 - py1)        # (1, AHW_PAD)
    union = b_area + p_area - inter + 1e-8
    out_ref[0] = inter * pl.reciprocal(union, approx=True)


def iou_pallas(anchors_flat, bboxes):
    """anchors_flat: (B, AHW, 4); bboxes: (B, N, 5) -> IoU (B, AHW, N)."""
    Bb = anchors_flat.shape[0]
    Nb = bboxes.shape[1]
    prop_t = jnp.transpose(anchors_flat, (0, 2, 1))                   # (B, 4, AHW)
    prop_t = jnp.pad(prop_t, ((0, 0), (0, 0), (0, AHW_PAD - AHW)))    # (B, 4, AHW_PAD)
    boxes = bboxes[..., :4]                                           # (B, N, 4)
    out = pl.pallas_call(
        _iou_kernel,
        grid=(Bb,),
        in_specs=[pl.BlockSpec((1, 4, AHW_PAD), lambda b: (b, 0, 0)),
                  pl.BlockSpec((1, Nb, 4), lambda b: (b, 0, 0))],
        out_specs=pl.BlockSpec((1, Nb, AHW_PAD), lambda b: (b, 0, 0)),
        out_shape=jax.ShapeDtypeStruct((Bb, Nb, AHW_PAD), jnp.float32),
        compiler_params=pltpu.CompilerParams(dimension_semantics=("parallel",)),
    )(prop_t, boxes)
    return jnp.transpose(out[:, :, :AHW], (0, 2, 1))                  # (B, AHW, N)


# ================================ glue (plain JAX) ================================

def generate_grid(batch_size, w_amap=7, h_amap=7):
    # TODO(synk): GenerateGrid not provided in reference; standard cell-center grid.
    w_range = jnp.arange(w_amap, dtype=jnp.float32) + 0.5
    h_range = jnp.arange(h_amap, dtype=jnp.float32) + 0.5
    wg = jnp.tile(w_range[None, :], (h_amap, 1))
    hg = jnp.tile(h_range[:, None], (1, w_amap))
    grid = jnp.stack([wg, hg], axis=-1)
    return jnp.broadcast_to(grid[None], (batch_size, h_amap, w_amap, 2))


def generate_anchor(anc, grid):
    # grid: (B, H, W, 2); anc: (A, 2) -> anchors (B, A, H, W, 4)
    cx = grid[:, None, :, :, 0]
    cy = grid[:, None, :, :, 1]
    aw = anc[None, :, None, None, 0]
    ah = anc[None, :, None, None, 1]
    return jnp.stack([cx - aw / 2, cy - ah / 2, cx + aw / 2, cy + ah / 2], axis=-1)


def reference_on_activated_anchors(anchors, bboxes, iou, neg_thresh=0.2):
    # TODO(synk): ReferenceOnActivatedAnchors is not defined in the reference; this is
    # a deterministic max-IoU assignment stand-in producing the same output semantics.
    Bb, A, Hh, Ww, _ = anchors.shape
    AHW_ = A * Hh * Ww
    Nb = bboxes.shape[1]
    best = jnp.argmax(iou, axis=1)                       # (B, N)
    b_ix = jnp.arange(Bb)[:, None]
    n_ix = jnp.arange(Nb)[None, :]
    pos_idx = (b_ix * AHW_ + best).reshape(-1)           # (M,)
    gt_conf = iou[b_ix, best, n_ix].reshape(-1)          # (M,)
    anc_flat = anchors.reshape(Bb, AHW_, 4)
    sel = anc_flat[b_ix, best]                           # (B, N, 4)
    axc = (sel[..., 0] + sel[..., 2]) / 2
    ayc = (sel[..., 1] + sel[..., 3]) / 2
    aw = sel[..., 2] - sel[..., 0]
    ah = sel[..., 3] - sel[..., 1]
    gxc = (bboxes[..., 0] + bboxes[..., 2]) / 2
    gyc = (bboxes[..., 1] + bboxes[..., 3]) / 2
    gw = bboxes[..., 2] - bboxes[..., 0]
    gh = bboxes[..., 3] - bboxes[..., 1]
    gt_offsets = jnp.stack([gxc - axc, gyc - ayc,
                            jnp.log(gw / aw), jnp.log(gh / ah)], axis=-1).reshape(-1, 4)
    gt_class = bboxes[..., 4].astype(jnp.int32).reshape(-1)
    max_iou = jnp.max(iou, axis=2).reshape(-1)           # (B*AHW,)
    neg_idx = jnp.argsort(max_iou)[: pos_idx.shape[0]]   # lowest-IoU anchors as negatives
    return pos_idx, neg_idx, gt_conf, gt_offsets, gt_class


def conf_score_regression(conf_scores, gt_conf_scores):
    gt = jnp.concatenate([jnp.ones_like(gt_conf_scores),
                          jnp.zeros_like(gt_conf_scores)], axis=0).reshape(-1, 1)
    return jnp.sum((conf_scores - gt) ** 2) / gt.shape[0]


def bbox_regression(offsets, gt_offsets):
    return jnp.sum((offsets - gt_offsets) ** 2) / gt_offsets.shape[0]


def object_classification(class_scores, gt_class, batch_size, anc_per_img, act_anc_ind):
    # TODO(synk): ObjectClassification not provided in reference; per-image-averaged CE.
    logp = jax.nn.log_softmax(class_scores, axis=-1)
    ce = -jnp.take_along_axis(logp, gt_class[:, None], axis=1)[:, 0]
    loss = 0.0
    for b in range(batch_size):
        mask = (act_anc_ind >= b * anc_per_img) & (act_anc_ind < (b + 1) * anc_per_img)
        cnt = jnp.maximum(jnp.sum(mask), 1)
        loss = loss + jnp.sum(jnp.where(mask, ce, 0.0)) / cnt
    return loss / batch_size


def prediction_network_forward(params, x_pad, pos_idx, neg_idx):
    out_pad = fused_stem_head_pallas(params, x_pad)            # (ROWS_PAD, OUT_PAD)
    out = out_pad[:ROWS, :OUT_CH].reshape(B, H, W, OUT_CH)
    # anc_data: (B, A, H, W, 5) flattened exactly like _extract_anchor_data
    anc = out[..., :5 * NUM_ANCHORS].reshape(B, H, W, NUM_ANCHORS, 5)
    anc = jnp.transpose(anc, (0, 3, 1, 2, 4)).reshape(B * NUM_ANCHORS * H * W, 5)
    # class scores expanded over A, flattened like _extract_class_scores
    cls = out[..., 5 * NUM_ANCHORS:]                           # (B, H, W, C)
    cls = jnp.broadcast_to(cls[:, None], (B, NUM_ANCHORS, H, W, NUM_CLASSES))
    cls = cls.reshape(B * NUM_ANCHORS * H * W, NUM_CLASSES)
    pos_data = anc[pos_idx]
    neg_data = anc[neg_idx]
    conf_scores = jnp.concatenate([pos_data, neg_data], axis=0)[:, :1]   # (2M, 1)
    offsets = pos_data[:, 1:]                                            # (M, 4)
    class_scores = cls[pos_idx]                                          # (M, C)
    return conf_scores, offsets, class_scores


@jax.jit
def single_stage_detector_forward(params, images, bboxes):
    Bi = images.shape[0]
    # TODO(synk): FeatureExtractor (MobileNetV2 backbone) is not provided; use a
    # deterministic 32x32 average-pool + fused 1x1-conv stem (3 -> IN_DIM) as stand-in.
    pooled = images.reshape(Bi, 3, H, 32, W, 32).mean(axis=(3, 5))        # (B, 3, 7, 7)
    pooled_flat = jnp.transpose(pooled, (0, 2, 3, 1)).reshape(Bi * H * W, 3)
    x_pad = jnp.pad(pooled_flat, ((0, ROWS_PAD - ROWS), (0, STEM_IN - 3)))

    grid = generate_grid(Bi)
    anchors = generate_anchor(ANCHOR_LIST, grid)                          # (B, A, H, W, 4)
    anc_per_img = NUM_ANCHORS * H * W
    iou = iou_pallas(anchors.reshape(Bi, anc_per_img, 4), bboxes)         # (B, AHW, N)

    pos_idx, neg_idx, gt_conf, gt_offsets, gt_class = \
        reference_on_activated_anchors(anchors, bboxes, iou, neg_thresh=0.2)

    conf_scores, offsets, class_scores = prediction_network_forward(
        params, x_pad, pos_idx, neg_idx)

    conf_loss = conf_score_regression(conf_scores, gt_conf)
    reg_loss = bbox_regression(offsets, gt_offsets)
    cls_loss = object_classification(class_scores, gt_class, Bi, anc_per_img, pos_idx)
    return 1.0 * conf_loss + 1.0 * reg_loss + 1.0 * cls_loss


def init_params(key):
    k = jax.random.split(key, 3)
    wf = jax.random.normal(k[0], (3, IN_DIM), jnp.float32) * 0.1
    bf = jnp.zeros((1, IN_DIM), jnp.float32)
    w1 = jax.random.normal(k[1], (IN_DIM, HIDDEN), jnp.float32) / jnp.sqrt(IN_DIM)
    b1 = jnp.zeros((1, HIDDEN), jnp.float32)
    w2 = jax.random.normal(k[2], (HIDDEN, OUT_CH), jnp.float32) / jnp.sqrt(HIDDEN)
    b2 = jnp.zeros((1, OUT_CH), jnp.float32)
    return dict(wf=wf, bf=bf, w1=w1, b1=b1, w2=w2, b2=b2)


if __name__ == "__main__":
    key = jax.random.PRNGKey(0)
    pkey, ikey, ckey, skey = jax.random.split(key, 4)
    params = init_params(pkey)

    images = jax.random.normal(ikey, (B, 3, 224, 224), jnp.float32)
    # GT boxes in 7x7 activation-map coordinates: (x_tl, y_tl, x_br, y_br, class)
    centers = jax.random.uniform(ckey, (B, N_BOX, 2), minval=1.5, maxval=5.5)
    sizes = jax.random.uniform(skey, (B, N_BOX, 2), minval=1.0, maxval=2.5)
    classes = jax.random.randint(jax.random.PRNGKey(1), (B, N_BOX, 1), 0,
                                 NUM_CLASSES).astype(jnp.float32)
    bboxes = jnp.concatenate([centers - sizes / 2, centers + sizes / 2, classes], axis=-1)

    total_loss = single_stage_detector_forward(params, images, bboxes)
    total_loss = jax.block_until_ready(total_loss)
    assert total_loss.shape == () and bool(jnp.isfinite(total_loss))
    print("KERNEL_OK")
</pallas_src>

<mosaic_0001>
module attributes {stable_mosaic.version = 11 : i64} {
  func.func @_fused_head_kernel(%arg0: memref<128x8xf32, #tpu.memory_space<vmem>>, %arg1: memref<8x64xbf16, #tpu.memory_space<vmem>>, %arg2: memref<1x64xf32, #tpu.memory_space<vmem>>, %arg3: memref<64x128xbf16, #tpu.memory_space<vmem>>, %arg4: memref<1x128xf32, #tpu.memory_space<vmem>>, %arg5: memref<128x128xbf16, #tpu.memory_space<vmem>>, %arg6: memref<1x128xf32, #tpu.memory_space<vmem>>, %arg7: memref<1x128xf32, #tpu.memory_space<vmem>>, %arg8: memref<1x128xf32, #tpu.memory_space<vmem>>, %arg9: memref<128x128xf32, #tpu.memory_space<vmem>>) attributes {dimension_semantics = [], scalar_prefetch = 0 : i64, scratch_operands = 0 : i64, tpu.core_type = #tpu.core_type<tc>} {
    %c0 = arith.constant 0 : index
    %c0_0 = arith.constant 0 : index
    %0 = vector.load %arg0[%c0, %c0_0] : memref<128x8xf32, #tpu.memory_space<vmem>>, vector<128x8xf32>
    %1 = arith.truncf %0 : vector<128x8xf32> to vector<128x8xbf16>
    %c0_1 = arith.constant 0 : index
    %c0_2 = arith.constant 0 : index
    %2 = vector.load %arg1[%c0_1, %c0_2] : memref<8x64xbf16, #tpu.memory_space<vmem>>, vector<8x64xbf16>
    %cst = arith.constant dense<0.000000e+00> : vector<128x64xf32>
    %3 = tpu.matmul %1, %2, %cst {dimension_numbers = #tpu.dot_dimension_numbers<[1], [0], [0], [1], [0, 0, 1, 1], [], []>} : vector<128x8xbf16>, vector<8x64xbf16>, vector<128x64xf32> -> vector<128x64xf32>
    %c0_3 = arith.constant 0 : index
    %c0_4 = arith.constant 0 : index
    %4 = vector.load %arg2[%c0_3, %c0_4] : memref<1x64xf32, #tpu.memory_space<vmem>>, vector<1x64xf32>
    %5 = vector.broadcast %4 : vector<1x64xf32> to vector<128x64xf32>
    %6 = arith.addf %3, %5 : vector<128x64xf32>
    %7 = arith.truncf %6 : vector<128x64xf32> to vector<128x64xbf16>
    %c0_5 = arith.constant 0 : index
    %c0_6 = arith.constant 0 : index
    %8 = vector.load %arg3[%c0_5, %c0_6] : memref<64x128xbf16, #tpu.memory_space<vmem>>, vector<64x128xbf16>
    %cst_7 = arith.constant dense<0.000000e+00> : vector<128x128xf32>
    %9 = tpu.matmul %7, %8, %cst_7 {dimension_numbers = #tpu.dot_dimension_numbers<[1], [0], [0], [1], [0, 0, 1, 1], [], []>} : vector<128x64xbf16>, vector<64x128xbf16>, vector<128x128xf32> -> vector<128x128xf32>
    %c0_8 = arith.constant 0 : index
    %c0_9 = arith.constant 0 : index
    %10 = vector.load %arg4[%c0_8, %c0_9] : memref<1x128xf32, #tpu.memory_space<vmem>>, vector<1x128xf32>
    %11 = vector.broadcast %10 : vector<1x128xf32> to vector<128x128xf32>
    %12 = arith.addf %9, %11 : vector<128x128xf32>
    %cst_10 = arith.constant 0.000000e+00 : f32
    %13 = vector.broadcast %cst_10 : f32 to vector<128x128xf32>
    %14 = arith.cmpf ogt, %12, %13 : vector<128x128xf32>
    %cst_11 = arith.constant 0.00999999977 : f32
    %15 = vector.broadcast %cst_11 : f32 to vector<128x128xf32>
    %16 = arith.mulf %15, %12 : vector<128x128xf32>
    %17 = arith.select %14, %12, %16 : vector<128x128xi1>, vector<128x128xf32>
    %18 = arith.truncf %17 : vector<128x128xf32> to vector<128x128xbf16>
    %c0_12 = arith.constant 0 : index
    %c0_13 = arith.constant 0 : index
    %19 = vector.load %arg5[%c0_12, %c0_13] : memref<128x128xbf16, #tpu.memory_space<vmem>>, vector<128x128xbf16>
    %cst_14 = arith.constant dense<0.000000e+00> : vector<128x128xf32>
    %20 = tpu.matmul %18, %19, %cst_14 {dimension_numbers = #tpu.dot_dimension_numbers<[1], [0], [0], [1], [0, 0, 1, 1], [], []>} : vector<128x128xbf16>, vector<128x128xbf16>, vector<128x128xf32> -> vector<128x128xf32>
    %c0_15 = arith.constant 0 : index
    %c0_16 = arith.constant 0 : index
    %21 = vector.load %arg6[%c0_15, %c0_16] : memref<1x128xf32, #tpu.memory_space<vmem>>, vector<1x128xf32>
    %22 = vector.broadcast %21 : vector<1x128xf32> to vector<128x128xf32>
    %23 = arith.addf %20, %22 : vector<128x128xf32>
    %cst_17 = arith.constant 5.000000e-01 : f32
    %24 = vector.broadcast %cst_17 : f32 to vector<128x128xf32>
    %25 = arith.mulf %24, %23 : vector<128x128xf32>
    %26 = math.tanh %25 : vector<128x128xf32>
    %cst_18 = arith.constant 5.000000e-01 : f32
    %27 = vector.broadcast %cst_18 : f32 to vector<128x128xf32>
    %28 = arith.mulf %27, %26 : vector<128x128xf32>
    %cst_19 = arith.constant 5.000000e-01 : f32
    %29 = vector.broadcast %cst_19 : f32 to vector<128x128xf32>
    %30 = arith.addf %28, %29 : vector<128x128xf32>
    %c0_20 = arith.constant 0 : index
    %c0_21 = arith.constant 0 : index
    %31 = vector.load %arg7[%c0_20, %c0_21] : memref<1x128xf32, #tpu.memory_space<vmem>>, vector<1x128xf32>
    %cst_22 = arith.constant 0.000000e+00 : f32
    %32 = vector.broadcast %cst_22 : f32 to vector<1x128xf32>
    %33 = arith.cmpf ogt, %31, %32 : vector<1x128xf32>
    %c0_23 = arith.constant 0 : index
    %c0_24 = arith.constant 0 : index
    %34 = vector.load %arg8[%c0_23, %c0_24] : memref<1x128xf32, #tpu.memory_space<vmem>>, vector<1x128xf32>
    %cst_25 = arith.constant 0.000000e+00 : f32
    %35 = vector.broadcast %cst_25 : f32 to vector<1x128xf32>
    %36 = arith.cmpf ogt, %34, %35 : vector<1x128xf32>
    %cst_26 = arith.constant 5.000000e-01 : f32
    %37 = vector.broadcast %cst_26 : f32 to vector<128x128xf32>
    %38 = arith.subf %30, %37 : vector<128x128xf32>
    %39 = vector.shape_cast %36 : vector<1x128xi1> to vector<1x128xi1>
    %40 = vector.broadcast %39 : vector<1x128xi1> to vector<128x128xi1>
    %41 = arith.select %40, %38, %23 : vector<128x128xi1>, vector<128x128xf32>
    %42 = vector.shape_cast %33 : vector<1x128xi1> to vector<1x128xi1>
    %43 = vector.broadcast %42 : vector<1x128xi1> to vector<128x128xi1>
    %44 = arith.select %43, %30, %41 : vector<128x128xi1>, vector<128x128xf32>
    %c0_27 = arith.constant 0 : index
    %c0_28 = arith.constant 0 : index
    %45 = vector.load %arg9[%c0_27, %c0_28] : memref<128x128xf32, #tpu.memory_space<vmem>>, vector<128x128xf32>
    tpu.vector_store %arg9[%c0_27, %c0_28], %44 {strides = array<i32>} : memref<128x128xf32, #tpu.memory_space<vmem>>, vector<128x128xf32>,
    return
  }
}

module attributes {stable_mosaic.version = 11 : i64} {
  func.func @_iou_kernel(%arg0: i32, %arg1: memref<1x4x512xf32, #tpu.memory_space<vmem>>, %arg2: memref<1x2x4xf32, #tpu.memory_space<vmem>>, %arg3: memref<1x2x512xf32, #tpu.memory_space<vmem>>) attributes {dimension_semantics = [#tpu.dimension_semantics<parallel>], iteration_bounds = array<i64: 2>, scalar_prefetch = 0 : i64, scratch_operands = 0 : i64, tpu.core_type = #tpu.core_type<tc>, window_params = [{transform_indices = @transform_0, window_bounds = array<i64: 1, 4, 512>}, {transform_indices = @transform_1, window_bounds = array<i64: 1, 2, 4>}, {transform_indices = @transform_2, window_bounds = array<i64: 1, 2, 512>}]} {
    %c0 = arith.constant 0 : index
    %c0_0 = arith.constant 0 : index
    %c0_1 = arith.constant 0 : index
    %0 = vector.load %arg1[%c0, %c0_0, %c0_1] : memref<1x4x512xf32, #tpu.memory_space<vmem>>, vector<1x4x512xf32>
    %1 = vector.shape_cast %0 : vector<1x4x512xf32> to vector<4x512xf32>
    %c0_2 = arith.constant 0 : index
    %c0_3 = arith.constant 0 : index
    %c0_4 = arith.constant 0 : index
    %2 = vector.load %arg2[%c0_2, %c0_3, %c0_4] : memref<1x2x4xf32, #tpu.memory_space<vmem>>, vector<1x2x4xf32>
    %3 = vector.shape_cast %2 : vector<1x2x4xf32> to vector<2x4xf32>
    %4 = vector.extract_strided_slice %1 {offsets = [0, 0], sizes = [1, 512], strides = [1, 1]} : vector<4x512xf32> to vector<1x512xf32>
    %5 = vector.extract_strided_slice %1 {offsets = [1, 0], sizes = [1, 512], strides = [1, 1]} : vector<4x512xf32> to vector<1x512xf32>
    %6 = vector.extract_strided_slice %1 {offsets = [2, 0], sizes = [1, 512], strides = [1, 1]} : vector<4x512xf32> to vector<1x512xf32>
    %7 = vector.extract_strided_slice %1 {offsets = [3, 0], sizes = [1, 512], strides = [1, 1]} : vector<4x512xf32> to vector<1x512xf32>
    %8 = vector.extract_strided_slice %3 {offsets = [0, 0], sizes = [2, 1], strides = [1, 1]} : vector<2x4xf32> to vector<2x1xf32>
    %9 = vector.extract_strided_slice %3 {offsets = [0, 1], sizes = [2, 1], strides = [1, 1]} : vector<2x4xf32> to vector<2x1xf32>
    %10 = vector.extract_strided_slice %3 {offsets = [0, 2], sizes = [2, 1], strides = [1, 1]} : vector<2x4xf32> to vector<2x1xf32>
    %11 = vector.extract_strided_slice %3 {offsets = [0, 3], sizes = [2, 1], strides = [1, 1]} : vector<2x4xf32> to vector<2x1xf32>
    %12 = vector.broadcast %4 : vector<1x512xf32> to vector<2x512xf32>
    %13 = vector.broadcast %8 : vector<2x1xf32> to vector<2x512xf32>
    %14 = arith.maximumf %12, %13 : vector<2x512xf32>
    %15 = vector.broadcast %5 : vector<1x512xf32> to vector<2x512xf32>
    %16 = vector.broadcast %9 : vector<2x1xf32> to vector<2x512xf32>
    %17 = arith.maximumf %15, %16 : vector<2x512xf32>
    %18 = vector.broadcast %6 : vector<1x512xf32> to vector<2x512xf32>
    %19 = vector.broadcast %10 : vector<2x1xf32> to vector<2x512xf32>
    %20 = arith.minimumf %18, %19 : vector<2x512xf32>
    %21 = vector.broadcast %7 : vector<1x512xf32> to vector<2x512xf32>
    %22 = vector.broadcast %11 : vector<2x1xf32> to vector<2x512xf32>
    %23 = arith.minimumf %21, %22 : vector<2x512xf32>
    %24 = arith.subf %20, %14 : vector<2x512xf32>
    %cst = arith.constant 0.000000e+00 : f32
    %25 = vector.broadcast %cst : f32 to vector<2x512xf32>
    %26 = arith.maximumf %24, %25 : vector<2x512xf32>
    %27 = arith.subf %23, %17 : vector<2x512xf32>
    %cst_5 = arith.constant 0.000000e+00 : f32
    %28 = vector.broadcast %cst_5 : f32 to vector<2x512xf32>
    %29 = arith.maximumf %27, %28 : vector<2x512xf32>
    %30 = arith.mulf %26, %29 : vector<2x512xf32>
    %31 = arith.subf %10, %8 : vector<2x1xf32>
    %32 = arith.subf %11, %9 : vector<2x1xf32>
    %33 = arith.mulf %31, %32 : vector<2x1xf32>
    %34 = arith.subf %6, %4 : vector<1x512xf32>
    %35 = arith.subf %7, %5 : vector<1x512xf32>
    %36 = arith.mulf %34, %35 : vector<1x512xf32>
    %37 = vector.broadcast %33 : vector<2x1xf32> to vector<2x512xf32>
    %38 = vector.broadcast %36 : vector<1x512xf32> to vector<2x512xf32>
    %39 = arith.addf %37, %38 : vector<2x512xf32>
    %40 = arith.subf %39, %30 : vector<2x512xf32>
    %cst_6 = arith.constant 9.99999993E-9 : f32
    %41 = vector.broadcast %cst_6 : f32 to vector<2x512xf32>
    %42 = arith.addf %40, %41 : vector<2x512xf32>
    %43 = tpu.reciprocal %42 {approx = true} : vector<2x512xf32> -> vector<2x512xf32>
    %44 = arith.mulf %30, %43 : vector<2x512xf32>
    %c0_7 = arith.constant 0 : index
    %c0_8 = arith.constant 0 : index
    %c0_9 = arith.constant 0 : index
    %45 = vector.load %arg3[%c0_7, %c0_8, %c0_9] : memref<1x2x512xf32, #tpu.memory_space<vmem>>, vector<1x2x512xf32>
    %46 = vector.shape_cast %45 : vector<1x2x512xf32> to vector<2x512xf32>
    %47 = vector.shape_cast %44 : vector<2x512xf32> to vector<1x2x512xf32>
    tpu.vector_store %arg3[%c0_7, %c0_8, %c0_9], %47 {strides = array<i32>} : memref<1x2x512xf32, #tpu.memory_space<vmem>>, vector<1x2x512xf32>,
    return
  }
  func.func @transform_0(%arg0: i32) -> (i32, i32, i32) {
    %c0_i32 = arith.constant 0 : i32
    %c0_i32_0 = arith.constant 0 : i32
    %c0_i32_1 = arith.constant 0 : i32
    return %arg0, %c0_i32, %c0_i32_0 : i32, i32, i32
  }
  func.func @transform_1(%arg0: i32) -> (i32, i32, i32) {
    %c0_i32 = arith.constant 0 : i32
    %c0_i32_0 = arith.constant 0 : i32
    %c0_i32_1 = arith.constant 0 : i32
    return %arg0, %c0_i32, %c0_i32_0 : i32, i32, i32
  }
  func.func @transform_2(%arg0: i32) -> (i32, i32, i32) {
    %c0_i32 = arith.constant 0 : i32
    %c0_i32_0 = arith.constant 0 : i32
    %c0_i32_1 = arith.constant 0 : i32
    return %arg0, %c0_i32, %c0_i32_0 : i32, i32, i32
  }
}

</mosaic_0001>

<bundles_post_ra>
// kernel: single_stage_detector_forward.3
= control target key start
LH: loop header
LB: loop body
LE: loop exit
PB: predicated region body
PF: predicated region fallthrough
CT: control target
= control target key end

     0   :  { %vm87_vm0 = vcmask 1043456   ;;  %vm62_vm1 = vcmask 64512   ;;  %vm184_vm2 = vcmask 523264   ;;  %s1052_s1 = inlined_call_operand.vmem [shape: bf16[8,64], index: 1, kind: input, shape index: {}]   ;;  %s1053_s0 = inlined_call_operand.vmem [shape: f32[128,8], index: 0, kind: input, shape index: {}]   ;;  %s1054_s2 = inlined_call_operand.vmem [shape: f32[1,64], index: 2, kind: input, shape index: {}]   ;;  %s1055_s3 = inlined_call_operand.vmem [shape: bf16[64,128], index: 3, kind: input, shape index: {}]   ;;  %s1056_s4 = inlined_call_operand.vmem [shape: f32[1,128], index: 4, kind: input, shape index: {}]   ;;  %s1057_s5 = inlined_call_operand.vmem [shape: bf16[128,128], index: 5, kind: input, shape index: {}]   ;;  %s1058_s6 = inlined_call_operand.vmem [shape: f32[1,128], index: 6, kind: input, shape index: {}]   ;;  %s1059_s8 = inlined_call_operand.vmem [shape: f32[1,128], index: 8, kind: input, shape index: {}]   ;;  %s1060_s7 = inlined_call_operand.vmem [shape: f32[1,128], index: 7, kind: input, shape index: {}]   ;;  %s1061_s9 = inlined_call_operand.vmem [shape: f32[128,128], index: 9, kind: output, shape index: {}]  }
   0x1   :  { %v57_v0 = vld [vmem:[%s1052_s1] sm:$0xf]  ;;  %v34_v2 = vld [vmem:[%s1053_s0 + $0x8] sm:$0xff]  ;;  %v35_v5 = vld [vmem:[%s1053_s0 + $0x10] sm:$0xff] }
   0x2   :  { %v33_v1 = vld [vmem:[%s1053_s0] sm:$0xff]  ;;  %v89_v3 = vsel %vm87_vm0, %v57_v0, 0  ;;  %v36_v6 = vld [vmem:[%s1053_s0 + $0x18] sm:$0xff]  ;;  %v38_v9 = vld [vmem:[%s1053_s0 + $0x28] sm:$0xff] }
   0x3   :  { %v49_v4 = vpack.c.bf16 %v34_v2, %v33_v1  ;;  %98 = vmatpush.bf16.msra.mxu0 %v89_v3  ;;  %v50_v7 = vpack.c.bf16 %v36_v6, %v35_v5  ;;  %v37_v8 = vld [vmem:[%s1053_s0 + $0x20] sm:$0xff]  ;;  %v39_v11 = vld [vmem:[%s1053_s0 + $0x30] sm:$0xff]  ;;  %v40_v12 = vld [vmem:[%s1053_s0 + $0x38] sm:$0xff] }
   0x4   :  { %v51_v10 = vpack.c.bf16 %v38_v9, %v37_v8  ;;  %v52_v13 = vpack.c.bf16 %v40_v12, %v39_v11  ;;  %v41_v14 = vld [vmem:[%s1053_s0 + $0x40] sm:$0xff]  ;;  %v42_v15 = vld [vmem:[%s1053_s0 + $0x48] sm:$0xff]  ;;  %v43_v17 = vld [vmem:[%s1053_s0 + $0x50] sm:$0xff] }
   0x5   :  { %v53_v16 = vpack.c.bf16 %v42_v15, %v41_v14  ;;  %v44_v18 = vld [vmem:[%s1053_s0 + $0x58] sm:$0xff]  ;;  %v45_v21 = vld [vmem:[%s1053_s0 + $0x60] sm:$0xff]  ;;  %v46_v22 = vld [vmem:[%s1053_s0 + $0x68] sm:$0xff] }
   0x6   :  { %573 = vmatmul.msk.bf16.vlgmr.msra.gmra.mxu0 %vm62_vm1, %v49_v4  ;;  %v54_v19 = vpack.c.bf16 %v44_v18, %v43_v17  ;;  %v656_v20 = vld [vmem:[%s1055_s3 + $0x18] sm:$0xff]  ;;  %v55_v23 = vpack.c.bf16 %v46_v22, %v45_v21  ;;  %v655_v24 = vld [vmem:[%s1055_s3 + $0x10] sm:$0xff]  ;;  %v654_v25 = vld [vmem:[%s1055_s3 + $0x8] sm:$0xff] }
   0x7   :  { %213 = vmatpush.bf16.msra.mxu1 %v656_v20  ;;  %v653_v26 = vld [vmem:[%s1055_s3] sm:$0xff]  ;;  %v47_v27 = vld [vmem:[%s1053_s0 + $0x70] sm:$0xff]  ;;  %v48_v28 = vld [vmem:[%s1053_s0 + $0x78] sm:$0xff] }
   0x8   :  { %v56_v29 = vpack.c.bf16 %v48_v28, %v47_v27  ;;  %v834_v31 = vld [vmem:[%s1054_s2] ss:$0 sm:$0xff]  ;;  %v664_v60 = vld [vmem:[%s1057_s5 + $0x38] sm:$0xff]  ;;  %v663_v62 = vld [vmem:[%s1057_s5 + $0x30] sm:$0xff] }
   0x9   :  { %382 = vmatpush.bf16.msra.mxu2 %v664_v60  ;;  %665 = vmatpush.bf16.msra.mxu3 %v664_v60  ;;  %v662_v63 = vld [vmem:[%s1057_s5 + $0x28] sm:$0xff]  ;;  %v661_v1 = vld [vmem:[%s1057_s5 + $0x20] sm:$0xff]  ;;  %v660_v5 = vld [vmem:[%s1057_s5 + $0x18] sm:$0xff] }
   0xa   :  { %v658_v9 = vld [vmem:[%s1057_s5 + $0x8] sm:$0xff] }
   0xb   :  { %214 = vmatpush.bf16.msra.mxu1 %v655_v24 }
   0xd   :  { %383 = vmatpush.bf16.msra.mxu2 %v663_v62  ;;  %666 = vmatpush.bf16.msra.mxu3 %v663_v62 }
   0xf   :  { %215 = vmatpush.bf16.msra.mxu1 %v654_v25 }
  0x11   :  { %384 = vmatpush.bf16.msra.mxu2 %v662_v63  ;;  %667 = vmatpush.bf16.msra.mxu3 %v662_v63 }
  0x13   :  { %216 = vmatpush.bf16.msra.mxu1 %v653_v26 }
  0x15   :  { %385 = vmatpush.bf16.msra.mxu2 %v661_v1  ;;  %668 = vmatpush.bf16.msra.mxu3 %v661_v1 }
  0x16   :  { %574 = vmatmul.msk.bf16.gmra.mxu0 %vm62_vm1, %v50_v7  ;;  %v659_v7 = vld [vmem:[%s1057_s5 + $0x10] sm:$0xff] }
  0x19   :  { %386 = vmatpush.bf16.msra.mxu2 %v660_v5  ;;  %669 = vmatpush.bf16.msra.mxu3 %v660_v5 }
  0x1d   :  { %387 = vmatpush.bf16.msra.mxu2 %v659_v7  ;;  %670 = vmatpush.bf16.msra.mxu3 %v659_v7 }
  0x21   :  { %388 = vmatpush.bf16.msra.mxu2 %v658_v9  ;;  %671 = vmatpush.bf16.msra.mxu3 %v658_v9 }
  0x26   :  { %575 = vmatmul.msk.bf16.gmra.mxu0 %vm62_vm1, %v51_v10  ;;  %v657_v10 = vld [vmem:[%s1057_s5] sm:$0xff] }
  0x27   :  { %389 = vmatpush.bf16.msra.mxu2 %v657_v10  ;;  %672 = vmatpush.bf16.msra.mxu3 %v657_v10 }
  0x36   :  { %576 = vmatmul.msk.bf16.gmra.mxu0 %vm62_vm1, %v52_v13 }
  0x46   :  { %577 = vmatmul.msk.bf16.gmra.mxu0 %vm62_vm1, %v53_v16  ;;  %v887_v16 = vld [vmem:[%s1056_s4] ss:$0 sm:$0xff] }
  0x56   :  { %578 = vmatmul.msk.bf16.gmra.mxu0 %vm62_vm1, %v54_v19 }
  0x66   :  { %579 = vmatmul.msk.bf16.gmra.mxu0 %vm62_vm1, %v55_v23 }
  0x76   :  { %580 = vmatmul.msk.bf16.gmra.mxu0 %vm62_vm1, %v56_v29 }
  0x83   :  { %v100_v30 = vpop.f32.mrf.mxu0 }
  0x84   :  { %v101_v33 = vadd.f32 %v834_v31, %v100_v30 }
  0x8b   :  { %v102_v32 = vpop.f32.mrf.mxu0 }
  0x8c   :  { %v103_v34 = vadd.f32 %v834_v31, %v102_v32 }
  0x8e   :  { %v140_v35 = vpack.c.bf16 %v103_v34, %v101_v33 }
  0x90   :  { %597 = vmatmul.msk.bf16.vlgmr.msra.gmra.mxu1 %vm184_vm2, %v140_v35 }
  0x93   :  { %v105_v36 = vpop.f32.mrf.mxu0 }
  0x94   :  { %v106_v38 = vadd.f32 %v834_v31, %v105_v36 }
  0x9b   :  { %v107_v37 = vpop.f32.mrf.mxu0 }
  0x9c   :  { %v108_v39 = vadd.f32 %v834_v31, %v107_v37 }
  0x9e   :  { %v141_v40 = vpack.c.bf16 %v108_v39, %v106_v38 }
  0xa0   :  { %598 = vmatmul.msk.bf16.gmra.mxu1 %vm184_vm2, %v141_v40 }
  0xa3   :  { %v110_v41 = vpop.f32.mrf.mxu0 }
  0xa4   :  { %v111_v43 = vadd.f32 %v834_v31, %v110_v41 }
  0xab   :  { %v112_v42 = vpop.f32.mrf.mxu0 }
  0xac   :  { %v113_v44 = vadd.f32 %v834_v31, %v112_v42 }
  0xae   :  { %v142_v45 = vpack.c.bf16 %v113_v44, %v111_v43 }
  0xb0   :  { %599 = vmatmul.msk.bf16.gmra.mxu1 %vm184_vm2, %v142_v45 }
  0xb3   :  { %v115_v46 = vpop.f32.mrf.mxu0 }
  0xb4   :  { %v116_v48 = vadd.f32 %v834_v31, %v115_v46 }
  0xbb   :  { %v117_v47 = vpop.f32.mrf.mxu0 }
  0xbc   :  { %v118_v49 = vadd.f32 %v834_v31, %v117_v47 }
  0xbe   :  { %v143_v50 = vpack.c.bf16 %v118_v49, %v116_v48 }
  0xc0   :  { %600 = vmatmul.msk.bf16.gmra.mxu1 %vm184_vm2, %v143_v50 }
  0xc3   :  { %v120_v51 = vpop.f32.mrf.mxu0 }
  0xc4   :  { %v121_v53 = vadd.f32 %v834_v31, %v120_v51 }
  0xcb   :  { %v122_v52 = vpop.f32.mrf.mxu0 }
  0xcc   :  { %v123_v54 = vadd.f32 %v834_v31, %v122_v52 }
  0xce   :  { %v144_v55 = vpack.c.bf16 %v123_v54, %v121_v53 }
  0xd0   :  { %601 = vmatmul.msk.bf16.gmra.mxu1 %vm184_vm2, %v144_v55 }
  0xd3   :  { %v125_v56 = vpop.f32.mrf.mxu0 }
  0xd4   :  { %v126_v58 = vadd.f32 %v834_v31, %v125_v56 }
  0xdb   :  { %v127_v57 = vpop.f32.mrf.mxu0 }
  0xdc   :  { %v128_v59 = vadd.f32 %v834_v31, %v127_v57 }
  0xde   :  { %v145_v61 = vpack.c.bf16 %v128_v59, %v126_v58 }
  0xe0   :  { %602 = vmatmul.msk.bf16.gmra.mxu1 %vm184_vm2, %v145_v61 }
  0xe3   :  { %v130_v0 = vpop.f32.mrf.mxu0 }
  0xe4   :  { %v131_v3 = vadd.f32 %v834_v31, %v130_v0 }
  0xeb   :  { %v132_v2 = vpop.f32.mrf.mxu0 }
  0xec   :  { %v133_v4 = vadd.f32 %v834_v31, %v132_v2 }
  0xee   :  { %v146_v6 = vpack.c.bf16 %v133_v4, %v131_v3 }
  0xf0   :  { %603 = vmatmul.msk.bf16.gmra.mxu1 %vm184_vm2, %v146_v6 }
  0xf3   :  { %v135_v8 = vpop.f32.mrf.mxu0 }
  0xf4   :  { %v136_v12 = vadd.f32 %v834_v31, %v135_v8 }
  0xfb   :  { %v137_v11 = vpop.f32.mrf.mxu0 }
  0xfc   :  { %v138_v13 = vadd.f32 %v834_v31, %v137_v11 }
  0xfe   :  { %v147_v14 = vpack.c.bf16 %v138_v13, %v136_v12 }
 0x100   :  { %604 = vmatmul.msk.bf16.gmra.mxu1 %vm184_vm2, %v147_v14 }
 0x10d   :  { %v218_v15 = vpop.f32.mrf.mxu1 }
 0x10e   :  { %v219_v17 = vadd.f32 %v887_v16, %v218_v15 }
 0x110   :  { %v274_v19 = vmul.f32 0.01, %v219_v17  ;;  %vm258_vm3 = vcmp.gt.f32.partialorder %v219_v17, 0.0 }
 0x112   :  { %v290_v22 = vsel %vm258_vm3, %v219_v17, %v274_v19 }
 0x115   :  { %v220_v18 = vpop.f32.mrf.mxu1 }
 0x116   :  { %v221_v20 = vadd.f32 %v887_v16, %v220_v18 }
 0x118   :  { %v275_v21 = vmul.f32 0.01, %v221_v20  ;;  %vm259_vm4 = vcmp.gt.f32.partialorder %v221_v20, 0.0 }
 0x11a   :  { %v291_v23 = vsel %vm259_vm4, %v221_v20, %v275_v21 }
 0x11b   :  { %v306_v24 = vpack.c.bf16 %v291_v23, %v290_v22 }
 0x11d   :  { %v223_v25 = vpop.f32.mrf.mxu1  ;;  %390 = vmatmul.bf16.vlgmr.msra.gmra.mxu2 %v306_v24 }
 0x11e   :  { %v224_v26 = vadd.f32 %v887_v16, %v223_v25  ;;  %v908_v25 = vld [vmem:[%s1058_s6] ss:$0 sm:$0xff] }
 0x120   :  { %v276_v28 = vmul.f32 0.01, %v224_v26  ;;  %vm260_vm5 = vcmp.gt.f32.partialorder %v224_v26, 0.0 }
 0x122   :  { %v292_v31 = vsel %vm260_vm5, %v224_v26, %v276_v28  ;;  %v497_v28 = vld [vmem:[%s1059_s8] sm:$0x1] }
 0x123   :  { %vm498_vm3 = vcmp.gt.f32.partialorder %v497_v28, 0.0 }
 0x125   :  { %v225_v27 = vpop.f32.mrf.mxu1 }
 0x126   :  { %v226_v29 = vadd.f32 %v887_v16, %v225_v27 }
 0x128   :  { %v277_v30 = vmul.f32 0.01, %v226_v29  ;;  %vm261_vm6 = vcmp.gt.f32.partialorder %v226_v29, 0.0 }
 0x12a   :  { %v293_v32 = vsel %vm261_vm6, %v226_v29, %v277_v30  ;;  %v495_v29 = vld [vmem:[%s1060_s7] sm:$0x1]  ;;  %v709_v30 = vmov 0  }
 0x12b   :  { %v307_v33 = vpack.c.bf16 %v293_v32, %v292_v31  ;;  %vm496_vm4 = vcmp.gt.f32.partialorder %v495_v29, 0.0  ;;  %v515_v31 = vsel %vm498_vm3, 1, %v709_v30 }
 0x12d   :  { %v228_v34 = vpop.f32.mrf.mxu1  ;;  %395 = vmatmul.bf16.gmra.mxu2 %v307_v33  ;;  %v534_v33 = vsel %vm496_vm4, 1, %v709_v30 }
 0x12e   :  { %v229_v35 = vadd.f32 %v887_v16, %v228_v34 }
 0x130   :  { %v278_v37 = vmul.f32 0.01, %v229_v35  ;;  %vm262_vm7 = vcmp.gt.f32.partialorder %v229_v35, 0.0 }
 0x132   :  { %v294_v40 = vsel %vm262_vm7, %v229_v35, %v278_v37 }
 0x135   :  { %v230_v36 = vpop.f32.mrf.mxu1 }
 0x136   :  { %v231_v38 = vadd.f32 %v887_v16, %v230_v36  ;;  %v516_v36 = vperm.slane %v515_v31, 0 }
 0x138   :  { %v279_v39 = vmul.f32 0.01, %v231_v38  ;;  %vm263_vm8 = vcmp.gt.f32.partialorder %v231_v38, 0.0  ;;  %vm918_vm5 = vcmp.eq.s32.totalorder %v516_v36, 1 }
 0x13a   :  { %v295_v41 = vsel %vm263_vm8, %v231_v38, %v279_v39  ;;  %v535_v39 = vperm.slane %v534_v33, 0 }
 0x13b   :  { %v308_v42 = vpack.c.bf16 %v295_v41, %v294_v40 }
 0x13c   :  { %vm922_vm6 = vcmp.eq.s32.totalorder %v535_v39, 1 }
 0x13d   :  { %v233_v43 = vpop.f32.mrf.mxu1  ;;  %400 = vmatmul.bf16.gmra.mxu2 %v308_v42 }
 0x13e   :  { %v234_v44 = vadd.f32 %v887_v16, %v233_v43 }
 0x140   :  { %v280_v46 = vmul.f32 0.01, %v234_v44  ;;  %vm264_vm9 = vcmp.gt.f32.partialorder %v234_v44, 0.0 }
 0x142   :  { %v296_v49 = vsel %vm264_vm9, %v234_v44, %v280_v46 }
 0x145   :  { %v235_v45 = vpop.f32.mrf.mxu1 }
 0x146   :  { %v236_v47 = vadd.f32 %v887_v16, %v235_v45 }
 0x148   :  { %v281_v48 = vmul.f32 0.01, %v236_v47  ;;  %vm265_vm10 = vcmp.gt.f32.partialorder %v236_v47, 0.0 }
 0x14a   :  { %v297_v50 = vsel %vm265_vm10, %v236_v47, %v281_v48 }
 0x14b   :  { %v309_v51 = vpack.c.bf16 %v297_v50, %v296_v49 }
 0x14d   :  { %v238_v52 = vpop.f32.mrf.mxu1  ;;  %405 = vmatmul.bf16.gmra.mxu2 %v309_v51 }
 0x14e   :  { %v239_v53 = vadd.f32 %v887_v16, %v238_v52 }
 0x150   :  { %v282_v55 = vmul.f32 0.01, %v239_v53  ;;  %vm266_vm11 = vcmp.gt.f32.partialorder %v239_v53, 0.0 }
 0x152   :  { %v298_v58 = vsel %vm266_vm11, %v239_v53, %v282_v55 }
 0x155   :  { %v240_v54 = vpop.f32.mrf.mxu1 }
 0x156   :  { %v241_v56 = vadd.f32 %v887_v16, %v240_v54 }
 0x158   :  { %v283_v57 = vmul.f32 0.01, %v241_v56  ;;  %vm267_vm12 = vcmp.gt.f32.partialorder %v241_v56, 0.0 }
 0x15a   :  { %v299_v59 = vsel %vm267_vm12, %v241_v56, %v283_v57 }
 0x15b   :  { %v310_v60 = vpack.c.bf16 %v299_v59, %v298_v58 }
 0x15d   :  { %v243_v61 = vpop.f32.mrf.mxu1  ;;  %410 = vmatmul.bf16.gmra.mxu2 %v310_v60 }
 0x15e   :  { %v244_v62 = vadd.f32 %v887_v16, %v243_v61 }
 0x160   :  { %v284_v0 = vmul.f32 0.01, %v244_v62  ;;  %vm268_vm13 = vcmp.gt.f32.partialorder %v244_v62, 0.0 }
 0x162   :  { %v300_v3 = vsel %vm268_vm13, %v244_v62, %v284_v0 }
 0x165   :  { %v245_v63 = vpop.f32.mrf.mxu1 }
 0x166   :  { %v246_v1 = vadd.f32 %v887_v16, %v245_v63 }
 0x168   :  { %v285_v2 = vmul.f32 0.01, %v246_v1  ;;  %vm269_vm14 = vcmp.gt.f32.partialorder %v246_v1, 0.0 }
 0x16a   :  { %v301_v4 = vsel %vm269_vm14, %v246_v1, %v285_v2 }
 0x16b   :  { %v311_v5 = vpack.c.bf16 %v301_v4, %v300_v3 }
 0x16d   :  { %v248_v6 = vpop.f32.mrf.mxu1  ;;  %415 = vmatmul.bf16.gmra.mxu2 %v311_v5 }
 0x16e   :  { %v249_v7 = vadd.f32 %v887_v16, %v248_v6 }
 0x170   :  { %v286_v9 = vmul.f32 0.01, %v249_v7  ;;  %vm270_vm15 = vcmp.gt.f32.partialorder %v249_v7, 0.0 }
 0x172   :  { %v302_v12 = vsel %vm270_vm15, %v249_v7, %v286_v9 }
 0x175   :  { %v250_v8 = vpop.f32.mrf.mxu1 }
 0x176   :  { %v251_v10 = vadd.f32 %v887_v16, %v250_v8 }
 0x178   :  { %v287_v11 = vmul.f32 0.01, %v251_v10  ;;  %vm271_vm0 = vcmp.gt.f32.partialorder %v251_v10, 0.0 }
 0x17a   :  { %v303_v13 = vsel %vm271_vm0, %v251_v10, %v287_v11 }
 0x17b   :  { %v312_v14 = vpack.c.bf16 %v303_v13, %v302_v12 }
 0x17d   :  { %v253_v15 = vpop.f32.mrf.mxu1  ;;  %420 = vmatmul.bf16.vlgmr.msra.gmra.mxu3 %v312_v14 }
 0x17e   :  { %v254_v17 = vadd.f32 %v887_v16, %v253_v15 }
 0x180   :  { %v288_v19 = vmul.f32 0.01, %v254_v17  ;;  %vm272_vm1 = vcmp.gt.f32.partialorder %v254_v17, 0.0 }
 0x182   :  { %v304_v22 = vsel %vm272_vm1, %v254_v17, %v288_v19 }
 0x185   :  { %v255_v18 = vpop.f32.mrf.mxu1 }
 0x186   :  { %v256_v20 = vadd.f32 %v887_v16, %v255_v18 }
 0x188   :  { %v289_v21 = vmul.f32 0.01, %v256_v20  ;;  %vm273_vm2 = vcmp.gt.f32.partialorder %v256_v20, 0.0 }
 0x18a   :  { %v305_v23 = vsel %vm273_vm2, %v256_v20, %v289_v21 }
 0x18b   :  { %v313_v24 = vpack.c.bf16 %v305_v23, %v304_v22 }
 0x18d   :  { %425 = vmatmul.bf16.gmra.mxu3 %v313_v24 }
 0x1a0   :  { %v391_v26 = vpop.f32.mrf.mxu2 }
 0x1a1   :  { %v392_v27 = vadd.f32 %v908_v25, %v391_v26 }
 0x1a3   :  { %v431_v16 = vmul.f32 0.5, %v392_v27 }
 0x1a5   :  { %677 = vtanh.f32 %v431_v16 }
 0x1a8   :  { %v393_v32 = vpop.f32.mrf.mxu2 }
 0x1a9   :  { %v394_v34 = vadd.f32 %v908_v25, %v393_v32 }
 0x1ab   :  { %v678_v35 = vpop.eup %677  ;;  %v432_v37 = vmul.f32 0.5, %v394_v34 }
 0x1ac   :  { %v463_v38 = vmul.f32 0.5, %v678_v35 }
 0x1ad   :  { %679 = vtanh.f32 %v432_v37 }
 0x1ae   :  { %v479_v40 = vadd.f32 0.5, %v463_v38 }
 0x1b0   :  { %v637_v42 = vadd.f32 -0.5, %v479_v40  ;;  %v396_v44 = vpop.f32.mrf.mxu2 }
 0x1b1   :  { %v397_v45 = vadd.f32 %v908_v25, %v396_v44 }
 0x1b2   :  { %v518_v46 = vsel %vm918_vm5, %v637_v42, %v392_v27 }
 0x1b3   :  { %v680_v47 = vpop.eup %679  ;;  %v537_v48 = vsel %vm922_vm6, %v479_v40, %v518_v46  ;;  %v433_v49 = vmul.f32 0.5, %v397_v45 }
 0x1b4   :  { %553 = vst [vmem:[%s1061_s9] sm:$0xff] %v537_v48  ;;  %v464_v50 = vmul.f32 0.5, %v680_v47 }
 0x1b5   :  { %681 = vtanh.f32 %v433_v49 }
 0x1b6   :  { %v480_v51 = vadd.f32 0.5, %v464_v50 }
 0x1b8   :  { %v638_v52 = vadd.f32 -0.5, %v480_v51  ;;  %v398_v53 = vpop.f32.mrf.mxu2 }
 0x1b9   :  { %v399_v54 = vadd.f32 %v908_v25, %v398_v53 }
 0x1ba   :  { %v519_v55 = vsel %vm918_vm5, %v638_v52, %v394_v34 }
 0x1bb   :  { %v682_v56 = vpop.eup %681  ;;  %v538_v57 = vsel %vm922_vm6, %v480_v51, %v519_v55  ;;  %v434_v58 = vmul.f32 0.5, %v399_v54 }
 0x1bc   :  { %554 = vst [vmem:[%s1061_s9 + $0x8] sm:$0xff] %v538_v57  ;;  %v465_v59 = vmul.f32 0.5, %v682_v56 }
 0x1bd   :  { %683 = vtanh.f32 %v434_v58 }
 0x1be   :  { %v481_v60 = vadd.f32 0.5, %v465_v59 }
 0x1c0   :  { %v639_v61 = vadd.f32 -0.5, %v481_v60  ;;  %v401_v62 = vpop.f32.mrf.mxu2 }
 0x1c1   :  { %v402_v63 = vadd.f32 %v908_v25, %v401_v62 }
 0x1c2   :  { %v520_v0 = vsel %vm918_vm5, %v639_v61, %v397_v45 }
 0x1c3   :  { %v684_v1 = vpop.eup %683  ;;  %v539_v2 = vsel %vm922_vm6, %v481_v60, %v520_v0  ;;  %v435_v3 = vmul.f32 0.5, %v402_v63 }
 0x1c4   :  { %555 = vst [vmem:[%s1061_s9 + $0x10] sm:$0xff] %v539_v2  ;;  %v466_v4 = vmul.f32 0.5, %v684_v1 }
 0x1c5   :  { %685 = vtanh.f32 %v435_v3 }
 0x1c6   :  { %v482_v5 = vadd.f32 0.5, %v466_v4 }
 0x1c8   :  { %v640_v6 = vadd.f32 -0.5, %v482_v5  ;;  %v403_v7 = vpop.f32.mrf.mxu2 }
 0x1c9   :  { %v404_v8 = vadd.f32 %v908_v25, %v403_v7 }
 0x1ca   :  { %v521_v9 = vsel %vm918_vm5, %v640_v6, %v399_v54 }
 0x1cb   :  { %v686_v10 = vpop.eup %685  ;;  %v540_v11 = vsel %vm922_vm6, %v482_v5, %v521_v9  ;;  %v436_v12 = vmul.f32 0.5, %v404_v8 }
 0x1cc   :  { %556 = vst [vmem:[%s1061_s9 + $0x18] sm:$0xff] %v540_v11  ;;  %v467_v13 = vmul.f32 0.5, %v686_v10 }
 0x1cd   :  { %687 = vtanh.f32 %v436_v12 }
 0x1ce   :  { %v483_v14 = vadd.f32 0.5, %v467_v13 }
 0x1d0   :  { %v641_v15 = vadd.f32 -0.5, %v483_v14  ;;  %v406_v17 = vpop.f32.mrf.mxu2 }
 0x1d1   :  { %v407_v18 = vadd.f32 %v908_v25, %v406_v17 }
 0x1d2   :  { %v522_v19 = vsel %vm918_vm5, %v641_v15, %v402_v63 }
 0x1d3   :  { %v688_v20 = vpop.eup %687  ;;  %v541_v21 = vsel %vm922_vm6, %v483_v14, %v522_v19  ;;  %v437_v22 = vmul.f32 0.5, %v407_v18 }
 0x1d4   :  { %557 = vst [vmem:[%s1061_s9 + $0x20] sm:$0xff] %v541_v21  ;;  %v468_v23 = vmul.f32 0.5, %v688_v20 }
 0x1d5   :  { %689 = vtanh.f32 %v437_v22 }
 0x1d6   :  { %v484_v24 = vadd.f32 0.5, %v468_v23 }
 0x1d8   :  { %v642_v26 = vadd.f32 -0.5, %v484_v24  ;;  %v408_v27 = vpop.f32.mrf.mxu2 }
 0x1d9   :  { %v409_v28 = vadd.f32 %v908_v25, %v408_v27 }
 0x1da   :  { %v523_v16 = vsel %vm918_vm5, %v642_v26, %v404_v8 }
 0x1db   :  { %v690_v29 = vpop.eup %689  ;;  %v542_v30 = vsel %vm922_vm6, %v484_v24, %v523_v16  ;;  %v438_v31 = vmul.f32 0.5, %v409_v28 }
 0x1dc   :  { %558 = vst [vmem:[%s1061_s9 + $0x28] sm:$0xff] %v542_v30  ;;  %v469_v32 = vmul.f32 0.5, %v690_v29 }
 0x1dd   :  { %691 = vtanh.f32 %v438_v31 }
 0x1de   :  { %v485_v33 = vadd.f32 0.5, %v469_v32 }
 0x1e0   :  { %v643_v34 = vadd.f32 -0.5, %v485_v33  ;;  %v411_v35 = vpop.f32.mrf.mxu2 }
 0x1e1   :  { %v412_v36 = vadd.f32 %v908_v25, %v411_v35 }
 0x1e2   :  { %v524_v37 = vsel %vm918_vm5, %v643_v34, %v407_v18 }
 0x1e3   :  { %v692_v38 = vpop.eup %691  ;;  %v543_v39 = vsel %vm922_vm6, %v485_v33, %v524_v37  ;;  %v439_v40 = vmul.f32 0.5, %v412_v36 }
 0x1e4   :  { %559 = vst [vmem:[%s1061_s9 + $0x30] sm:$0xff] %v543_v39  ;;  %v470_v42 = vmul.f32 0.5, %v692_v38 }
 0x1e5   :  { %693 = vtanh.f32 %v439_v40 }
 0x1e6   :  { %v486_v44 = vadd.f32 0.5, %v470_v42 }
 0x1e8   :  { %v644_v45 = vadd.f32 -0.5, %v486_v44  ;;  %v413_v46 = vpop.f32.mrf.mxu2 }
 0x1e9   :  { %v414_v47 = vadd.f32 %v908_v25, %v413_v46 }
 0x1ea   :  { %v525_v48 = vsel %vm918_vm5, %v644_v45, %v409_v28 }
 0x1eb   :  { %v694_v49 = vpop.eup %693  ;;  %v544_v50 = vsel %vm922_vm6, %v486_v44, %v525_v48  ;;  %v440_v51 = vmul.f32 0.5, %v414_v47 }
 0x1ec   :  { %560 = vst [vmem:[%s1061_s9 + $0x38] sm:$0xff] %v544_v50  ;;  %v471_v52 = vmul.f32 0.5, %v694_v49 }
 0x1ed   :  { %695 = vtanh.f32 %v440_v51 }
 0x1ee   :  { %v487_v53 = vadd.f32 0.5, %v471_v52 }
 0x1f0   :  { %v645_v54 = vadd.f32 -0.5, %v487_v53  ;;  %v416_v55 = vpop.f32.mrf.mxu2 }
 0x1f1   :  { %v417_v56 = vadd.f32 %v908_v25, %v416_v55 }
 0x1f2   :  { %v526_v57 = vsel %vm918_vm5, %v645_v54, %v412_v36 }
 0x1f3   :  { %v696_v58 = vpop.eup %695  ;;  %v545_v59 = vsel %vm922_vm6, %v487_v53, %v526_v57  ;;  %v441_v60 = vmul.f32 0.5, %v417_v56 }
 0x1f4   :  { %561 = vst [vmem:[%s1061_s9 + $0x40] sm:$0xff] %v545_v59  ;;  %v472_v61 = vmul.f32 0.5, %v696_v58 }
 0x1f5   :  { %697 = vtanh.f32 %v441_v60 }
 0x1f6   :  { %v488_v62 = vadd.f32 0.5, %v472_v61 }
 0x1f8   :  { %v646_v63 = vadd.f32 -0.5, %v488_v62  ;;  %v418_v0 = vpop.f32.mrf.mxu2 }
 0x1f9   :  { %v419_v1 = vadd.f32 %v908_v25, %v418_v0 }
 0x1fa   :  { %v527_v2 = vsel %vm918_vm5, %v646_v63, %v414_v47 }
 0x1fb   :  { %v698_v3 = vpop.eup %697  ;;  %v546_v4 = vsel %vm922_vm6, %v488_v62, %v527_v2  ;;  %v442_v5 = vmul.f32 0.5, %v419_v1 }
 0x1fc   :  { %562 = vst [vmem:[%s1061_s9 + $0x48] sm:$0xff] %v546_v4  ;;  %v473_v6 = vmul.f32 0.5, %v698_v3 }
 0x1fd   :  { %699 = vtanh.f32 %v442_v5 }
 0x1fe   :  { %v489_v7 = vadd.f32 0.5, %v473_v6 }
 0x200   :  { %v647_v8 = vadd.f32 -0.5, %v489_v7  ;;  %v421_v9 = vpop.f32.mrf.mxu3 }
 0x201   :  { %v422_v10 = vadd.f32 %v908_v25, %v421_v9 }
 0x202   :  { %v528_v11 = vsel %vm918_vm5, %v647_v8, %v417_v56 }
 0x203   :  { %v700_v12 = vpop.eup %699  ;;  %v547_v13 = vsel %vm922_vm6, %v489_v7, %v528_v11  ;;  %v443_v14 = vmul.f32 0.5, %v422_v10 }
 0x204   :  { %563 = vst [vmem:[%s1061_s9 + $0x50] sm:$0xff] %v547_v13  ;;  %v474_v15 = vmul.f32 0.5, %v700_v12 }
 0x205   :  { %701 = vtanh.f32 %v443_v14 }
 0x206   :  { %v490_v17 = vadd.f32 0.5, %v474_v15 }
 0x208   :  { %v648_v18 = vadd.f32 -0.5, %v490_v17  ;;  %v423_v19 = vpop.f32.mrf.mxu3 }
 0x209   :  { %v424_v20 = vadd.f32 %v908_v25, %v423_v19 }
 0x20a   :  { %v529_v21 = vsel %vm918_vm5, %v648_v18, %v419_v1 }
 0x20b   :  { %v702_v22 = vpop.eup %701  ;;  %v548_v23 = vsel %vm922_vm6, %v490_v17, %v529_v21  ;;  %v444_v24 = vmul.f32 0.5, %v424_v20 }
 0x20c   :  { %564 = vst [vmem:[%s1061_s9 + $0x58] sm:$0xff] %v548_v23  ;;  %v475_v26 = vmul.f32 0.5, %v702_v22 }
 0x20d   :  { %703 = vtanh.f32 %v444_v24 }
 0x20e   :  { %v491_v27 = vadd.f32 0.5, %v475_v26 }
 0x210   :  { %v649_v28 = vadd.f32 -0.5, %v491_v27  ;;  %v426_v16 = vpop.f32.mrf.mxu3 }
 0x211   :  { %v427_v29 = vadd.f32 %v908_v25, %v426_v16 }
 0x212   :  { %v530_v30 = vsel %vm918_vm5, %v649_v28, %v422_v10 }
 0x213   :  { %v704_v31 = vpop.eup %703  ;;  %v549_v32 = vsel %vm922_vm6, %v491_v27, %v530_v30  ;;  %v445_v33 = vmul.f32 0.5, %v427_v29 }
 0x214   :  { %565 = vst [vmem:[%s1061_s9 + $0x60] sm:$0xff] %v549_v32  ;;  %v476_v34 = vmul.f32 0.5, %v704_v31 }
 0x215   :  { %705 = vtanh.f32 %v445_v33 }
 0x216   :  { %v492_v35 = vadd.f32 0.5, %v476_v34 }
 0x218   :  { %v650_v36 = vadd.f32 -0.5, %v492_v35  ;;  %v428_v37 = vpop.f32.mrf.mxu3 }
 0x219   :  { %v429_v38 = vadd.f32 %v908_v25, %v428_v37 }
 0x21a   :  { %v531_v39 = vsel %vm918_vm5, %v650_v36, %v424_v20 }
 0x21b   :  { %v706_v40 = vpop.eup %705  ;;  %v550_v42 = vsel %vm922_vm6, %v492_v35, %v531_v39  ;;  %v446_v44 = vmul.f32 0.5, %v429_v38 }
 0x21c   :  { %566 = vst [vmem:[%s1061_s9 + $0x68] sm:$0xff] %v550_v42  ;;  %v477_v45 = vmul.f32 0.5, %v706_v40 }
 0x21d   :  { %707 = vtanh.f32 %v446_v44 }
 0x21e   :  { %v493_v46 = vadd.f32 0.5, %v477_v45 }
 0x220   :  { %v651_v47 = vadd.f32 -0.5, %v493_v46 }
 0x222   :  { %v532_v48 = vsel %vm918_vm5, %v651_v47, %v427_v29 }
 0x223   :  { %v708_v25 = vpop.eup %707  ;;  %v551_v49 = vsel %vm922_vm6, %v493_v46, %v532_v48 }
 0x224   :  { %567 = vst [vmem:[%s1061_s9 + $0x70] sm:$0xff] %v551_v49  ;;  %v478_v50 = vmul.f32 0.5, %v708_v25 }
 0x226   :  { %v494_v51 = vadd.f32 0.5, %v478_v50 }
 0x228   :  { %v652_v52 = vadd.f32 -0.5, %v494_v51 }
 0x22a   :  { %v533_v53 = vsel %vm918_vm5, %v652_v52, %v429_v38 }
 0x22b   :  { %v552_v54 = vsel %vm922_vm6, %v494_v51, %v533_v53 }
 0x22c   :  { %568 = vst [vmem:[%s1061_s9 + $0x78] sm:$0xff] %v552_v54 }

// kernel: single_stage_detector_forward.2
= control target key start
LH: loop header
LB: loop body
LE: loop exit
PB: predicated region body
PF: predicated region fallthrough
CT: control target
= control target key end

     0   :  { %s485_s9 = smov 0   ;;  %s522_s0 = inlined_call_operand.vmem [shape: f32[2,4,512], index: 0, kind: input, shape index: {}]   ;;  %s523_s1 = inlined_call_operand.vmem [shape: f32[2,2,4], index: 1, kind: input, shape index: {}]   ;;  %s524_s2 = inlined_call_operand.vmem [shape: f32[2,2,512], index: 2, kind: output, shape index: {}]  }
   0x1 LB: > { %s413_s10 = sadd.s32 4294967295, %s462_s9   ;;  %p417_p0 = scmp.ge.s32.totalorder %s462_s9, 1  ;;  %s462_s9 = sphi %s485_s9, %s12_s9  }
   0x2   : > { %p121_p1 = scmp.lt.s32.totalorder %s462_s9, 3 }
   0x4   : > { %p122_p2 = pnand %p417_p0, %p121_p1 }
   0x5   : > { %p147_p3 = scmp.lt.s32.totalorder (!%p122_p2), %s413_s10, 1  ;;  %s464_s15 = smov (!%p122_p2), 2  }
   0x6   : > { %125 = sbr.rel (%p122_p2) target bundleno = 387 (0x183), region = 28  ;;  %s467_s16 = smov (!%p122_p2), 127  }
   0xb   : > { %s526_s10 = smov (!%p147_p3, %s413_s10), 1  ;;  %v465_v1 = vmov 0   ;;  %v466_v2 = vmov 1   ;;  %v468_v5 = vmov 2   ;;  %v469_v6 = vmov 3  }
   0xc   : > { %s420_s11 = sshll.u32 %s526_s10, 1  ;;  %443 = vset.pattern.permute.xlu1 %v465_v1  ;;  %447 = vset.pattern.permute.xlu0 %v468_v5  ;;  %s427_s17 = sshll.u32 %s526_s10, 4  ;;  %vm338_vm0 = vcmask 1041408   ;;  %vm340_vm1 = vcmask 1045508   ;;  %vm342_vm2 = vcmask 1043456  }
   0xd   : > { %s155_s14 = scalar_lea.vmem %s523_s1, %s420_s11  ;;  %445 = vset.pattern.permute.xlu2 %v468_v5  ;;  %s151_s20 = scalar_lea.vmem %s522_s0, %s427_s17 }
   0xe   : > { %v163_v0 = vld [vmem:[%s155_s14] sm:$0x3]  ;;  %v162_v10 = vld [vmem:[%s151_s20 + $0x8] sm:$0xff]  ;;  %s428_s21 = sshll.u32 %s526_s10, 3 }
   0xf   : > { %267 = vrot.lane.b32.xlu0 %v163_v0, %s464_s15  ;;  %180 = vperm.xlu1 %443, %v163_v0   ;;  %v161_v9 = vld [vmem:[%s151_s20] sm:$0xff]  ;;  %v209_v17 = vperm.slane %v162_v10, 2  ;;  %v210_v18 = vperm.slane %v162_v10, 6  ;;  %v168_v19 = vperm.slane %v162_v10, 0  ;;  %v169_v20 = vperm.slane %v162_v10, 4  ;;  %s160_s24 = scalar_lea.vmem %s524_s2, %s428_s21 }
  0x10   : > { %220 = vperm.xlu2 %445, %v163_v0   ;;  %v207_v13 = vperm.slane %v161_v9, 2  ;;  %v208_v14 = vperm.slane %v161_v9, 6  ;;  %v166_v15 = vperm.slane %v161_v9, 0  ;;  %v167_v16 = vperm.slane %v161_v9, 4 }
  0x11   : > { %v276_v21 = vrot.slane %v161_v9, 6  ;;  %v277_v22 = vrot.slane %v162_v10, 6  ;;  %v187_v23 = vperm.slane %v161_v9, 1  ;;  %v188_v24 = vperm.slane %v161_v9, 5 }
  0x12   : > { %v189_v25 = vperm.slane %v162_v10, 1  ;;  %v190_v26 = vperm.slane %v162_v10, 5  ;;  %v215_v27 = vperm.slane %v207_v13, 2  ;;  %v216_v28 = vperm.slane %v208_v14, 2 }
  0x13   : > { %v174_v29 = vperm.slane %v166_v15, 0  ;;  %v175_v30 = vperm.slane %v167_v16, 0  ;;  %v227_v31 = vperm.slane %v161_v9, 3  ;;  %v228_v32 = vperm.slane %v161_v9, 7 }
  0x14   : > { %v229_v33 = vperm.slane %v162_v10, 3  ;;  %v230_v34 = vperm.slane %v162_v10, 7  ;;  %v176_v35 = vperm.slane %v168_v19, 0  ;;  %v177_v36 = vperm.slane %v169_v20, 0 }
  0x15   : > { %v280_v37 = vsub.f32 %v161_v9, %v276_v21  ;;  %v281_v38 = vsub.f32 %v162_v10, %v277_v22  ;;  %v195_v39 = vperm.slane %v187_v23, 1  ;;  %v196_v40 = vperm.slane %v188_v24, 1 }
  0x16   : > { %v197_v41 = vperm.slane %v189_v25, 1  ;;  %v198_v42 = vperm.slane %v190_v26, 1  ;;  %v217_v43 = vperm.slane %v209_v17, 2  ;;  %v218_v44 = vperm.slane %v210_v18, 2 }
  0x17   : > { %444 = vset.pattern.permute.xlu1 %v466_v2  ;;  %v235_v48 = vperm.slane %v227_v31, 3  ;;  %v236_v49 = vperm.slane %v228_v32, 3  ;;  %v237_v50 = vperm.slane %v229_v33, 3  ;;  %v238_v51 = vperm.slane %v230_v34, 3 }
  0x18   : > { %200 = vperm.xlu1 %444, %v163_v0   ;;  %446 = vset.pattern.permute.xlu2 %v469_v6  ;;  %v423_v55 = vrot.slane %v280_v37, 9  ;;  %v424_v56 = vrot.slane %v281_v38, 9 }
  0x19   : > { %240 = vperm.xlu2 %446, %v163_v0  }
  0x1a   : > { %v290_v5 = vmul.f32 %v423_v55, %v280_v37  ;;  %v291_v6 = vmul.f32 %v424_v56, %v281_v38 }
  0x1c   : > { %v299_v16 = vperm.slane %v290_v5, 2  ;;  %v300_v17 = vperm.slane %v290_v5, 6  ;;  %v301_v18 = vperm.slane %v291_v6, 2  ;;  %v302_v19 = vperm.slane %v291_v6, 6 }
  0x6a   : > { %v505_v12 = vpop.permute.xlu2 %220 }
  0x6b   : > { %v223_v61 = vmin.f32 %v215_v27, %v505_v12  ;;  %v224_v62 = vmin.f32 %v216_v28, %v505_v12  ;;  %v225_v63 = vmin.f32 %v217_v43, %v505_v12  ;;  %v307_v27 = vperm.slane %v299_v16, 2 }
  0x6c   : > { %v308_v28 = vperm.slane %v300_v17, 2 }
  0x73   : > { %v241_v54 = vpop.permute.xlu2 %240 }
  0x74   : > { %v243_v1 = vmin.f32 %v235_v48, %v241_v54  ;;  %v244_v2 = vmin.f32 %v236_v49, %v241_v54 }
  0x81   : > { %v268_v3 = vpop.permute.xlu0 %267  ;;  %v503_v11 = vpop.permute.xlu1 %180 }
  0x82   : > { %v270_v4 = vsub.f32 %v163_v0, %v268_v3  ;;  %v183_v45 = vmax.f32 %v174_v29, %v503_v11  ;;  %v184_v46 = vmax.f32 %v175_v30, %v503_v11  ;;  %v185_v52 = vmax.f32 %v176_v35, %v503_v11 }
  0x83   : > { %v186_v53 = vmax.f32 %v177_v36, %v503_v11  ;;  %v226_v0 = vmin.f32 %v218_v44, %v505_v12  ;;  %v245_v3 = vmin.f32 %v237_v50, %v241_v54  ;;  %v309_v29 = vperm.slane %v301_v18, 2 }
  0x84   : > { %272 = vrot.lane.b32.xlu0 %v270_v4, %s467_s16  ;;  %v249_v9 = vsub.f32 %v225_v63, %v185_v52  ;;  %v310_v30 = vperm.slane %v302_v19, 2 }
  0x85   : > { %v250_v10 = vsub.f32 %v226_v0, %v186_v53 }
  0x86   : > { %v253_v21 = vmax.f32 %v249_v9, 0.0 }
  0x87   : > { %v254_v22 = vmax.f32 %v250_v10, 0.0 }
  0x8a   : > { %v201_v47 = vpop.permute.xlu1 %200 }
  0x8b   : > { %v203_v57 = vmax.f32 %v195_v39, %v201_v47  ;;  %v204_v58 = vmax.f32 %v196_v40, %v201_v47  ;;  %v205_v59 = vmax.f32 %v197_v41, %v201_v47  ;;  %v206_v60 = vmax.f32 %v198_v42, %v201_v47 }
  0x8d   : > { %v255_v11 = vsub.f32 %v243_v1, %v203_v57  ;;  %v256_v13 = vsub.f32 %v244_v2, %v204_v58  ;;  %v257_v14 = vsub.f32 %v245_v3, %v205_v59 }
  0x8f   : > { %v259_v23 = vmax.f32 %v255_v11, 0.0  ;;  %v260_v24 = vmax.f32 %v256_v13, 0.0  ;;  %v261_v25 = vmax.f32 %v257_v14, 0.0 }
  0x91   : > { %v265_v34 = vmul.f32 %v261_v25, %v253_v21 }
  0xf6   : > { %v273_v7 = vpop.permute.xlu0 %272 }
  0xf7   : > { %v275_v8 = vmul.f32 %v273_v7, %v270_v4  ;;  %v246_v4 = vmin.f32 %v238_v51, %v241_v54  ;;  %v247_v7 = vsub.f32 %v223_v61, %v183_v45 }
  0xf9   : > { %294 = vperm.xlu0 %447, %v275_v8   ;;  %v248_v8 = vsub.f32 %v224_v62, %v184_v46  ;;  %v258_v15 = vsub.f32 %v246_v4, %v206_v60  ;;  %v251_v20 = vmax.f32 %v247_v7, 0.0 }
  0xfb   : > { %v252_v12 = vmax.f32 %v248_v8, 0.0  ;;  %v262_v26 = vmax.f32 %v258_v15, 0.0  ;;  %v263_v32 = vmul.f32 %v259_v23, %v251_v20 }
  0xfd   : > { %v264_v33 = vmul.f32 %v260_v24, %v252_v12  ;;  %v266_v35 = vmul.f32 %v262_v26, %v254_v22 }
 0x16b   : > { %v295_v31 = vpop.permute.xlu0 %294 }
 0x16c   : > { %v311_v36 = vadd.f32 %v307_v27, %v295_v31  ;;  %v312_v37 = vadd.f32 %v308_v28, %v295_v31  ;;  %v313_v38 = vadd.f32 %v309_v29, %v295_v31  ;;  %v314_v39 = vadd.f32 %v310_v30, %v295_v31 }
 0x16e   : > { %v315_v40 = vsub.f32 %v311_v36, %v263_v32  ;;  %v316_v41 = vsub.f32 %v312_v37, %v264_v33  ;;  %v317_v42 = vsub.f32 %v313_v38, %v265_v34  ;;  %v318_v43 = vsub.f32 %v314_v39, %v266_v35 }
 0x170   : > { %v319_v44 = vadd.f32 1e-08, %v315_v40  ;;  %v320_v45 = vadd.f32 1e-08, %v316_v41  ;;  %v321_v46 = vadd.f32 1e-08, %v317_v42 }
 0x171   : > { %v322_v47 = vadd.f32 1e-08, %v318_v43 }
 0x172   : > { %448 = vrcp.f32 %v319_v44 }
 0x173   : > { %450 = vrcp.f32 %v320_v45 }
 0x174   : > { %452 = vrcp.f32 %v321_v46 }
 0x175   : > { %454 = vrcp.f32 %v322_v47 }
 0x178   : > { %v449_v48 = vpop.eup %448 }
 0x179   : > { %v451_v49 = vpop.eup %450  ;;  %v327_v54 = vmul.f32 %v449_v48, %v263_v32 }
 0x17a   : > { %v453_v50 = vpop.eup %452  ;;  %v328_v51 = vmul.f32 %v451_v49, %v264_v33 }
 0x17b   : > { %v455_v52 = vpop.eup %454  ;;  %v329_v53 = vmul.f32 %v453_v50, %v265_v34 }
 0x17c   : > { %v330_v55 = vmul.f32 %v455_v52, %v266_v35  ;;  %v335_v56 = vrot.slane %v328_v51, 6 }
 0x17d   : > { %v336_v57 = vrot.slane %v329_v53, 4 }
 0x17e   : > { %v337_v58 = vrot.slane %v330_v55, 2  ;;  %v339_v59 = vsel %vm338_vm0, %v327_v54, %v335_v56 }
 0x180   : > { %v341_v60 = vsel %vm340_vm1, %v336_v57, %v337_v58 }
 0x181   : > { %v343_v61 = vsel %vm342_vm2, %v339_v59, %v341_v60 }
 0x182   : > { %345 = vst [vmem:[%s160_s24] sm:$0xff] %v343_v61 }
 0x183 PF: > { %s12_s9 = sadd.s32 1, %s462_s9  }
 0x184   : > { %p9_p4 = scmp.ge.s32.totalorder %s12_s9, 4  }
 0x186   :  { %11 = sbr.rel (!%p9_p4) target bundleno = 1 (0x1), region = 61 }

</bundles_post_ra>
